<compile_context>
chip_gen: v5e
topology: v5e:2x2
jax: 0.10.0
libtpu: 0.0.40
codegen_flags: <defaults>
</compile_context>

<pallas_src>
import functools

import jax
import jax.numpy as jnp
from jax.experimental import pallas as pl
from jax.experimental.pallas import tpu as pltpu

_PAD = 128   # lane-aligned zero pad on each side of x inside the VMEM scratch


def _elu(x):
    # ELU(alpha=1): x if x > 0 else exp(x) - 1   (f32; exp goes to the EUP slot)
    return jnp.where(x > 0, x, jnp.exp(jnp.minimum(x, 0.0)) - 1.0)


def _make_kernel(C, L, bb, shifts, mm_dtype):
    Lp = L + 2 * _PAD

    def kernel(x_ref, w1_ref, b1_ref, wc_ref, bc_ref,
               out_res_ref, out_c_ref, xpad_ref, slab_ref):
        # Zero-padded copy of x built in VMEM (replaces the old jnp.pad HBM pass
        # and the duplicate x input).  Stores are aligned full rows / tiles.
        xpad_ref[...] = jnp.zeros((bb, C, Lp), jnp.float32)
        for b in range(bb):
            xpad_ref[b, :, _PAD:_PAD + L] = x_ref[b]

        # im2col slab: row block j holds x shifted by shifts[j] (matching the
        # column layout of w1); lane block b holds batch element b.
        for b in range(bb):
            xp = xpad_ref[b]                               # (C, Lp)
            for j, s in enumerate(shifts):
                off = _PAD + s
                slab_ref[j * C:(j + 1) * C, b * L:(b + 1) * L] = xp[:, off:off + L]

        slab = slab_ref[...].astype(mm_dtype)              # (n_shifts*C, bb*L)

        # Single MXU push: rows [res_conv ; conv_a ; conv_b] pre-activations.
        z = jnp.dot(w1_ref[...], slab,
                    preferred_element_type=jnp.float32) + b1_ref[...]

        res = z[:C]                                        # (C, bb*L) f32
        h = _elu(z[C:])                                    # (2C, bb*L) = ELU([a; b])
        # TODO(synk): dropout is identity in eval / p=0.0, so it is omitted.

        # conv_c: one (C, 2C) @ (2C, bb*L) matmul (no split-weight add).
        y = jnp.dot(wc_ref[...], h.astype(mm_dtype),
                    preferred_element_type=jnp.float32) + bc_ref[...]
        out = res + y

        for b in range(bb):                                # lane-dense (C, L) stores
            sl = slice(b * L, (b + 1) * L)
            out_c_ref[b] = y[:, sl].astype(out_c_ref.dtype)
            out_res_ref[b] = out[:, sl].astype(out_res_ref.dtype)

    return kernel


def residual_block_forward(x, params, *, kernel_size, dilation,
                           matmul_dtype=jnp.float32, batch_block=None):
    """x: (B, C, L) float32.  Returns (res_x + y, y), each (B, C, L)."""
    B, C, L = x.shape
    K = kernel_size
    assert K % 2 == 1, "odd kernel_size assumed ('same'-padding semantics)"
    dil_a, dil_b = dilation, 2 * dilation
    pad_a = (K // 2) * dil_a
    pad_b = 2 * pad_a

    # Tap shifts (offsets into x) for each conv; res_conv is shift 0.
    shifts_a = [k * dil_a - pad_a for k in range(K)]
    shifts_b = [k * dil_b - pad_b for k in range(K)]
    shifts = tuple(sorted(set([0] + shifts_a + shifts_b)))
    col = {s: j for j, s in enumerate(shifts)}
    S = len(shifts)
    assert max(abs(s) for s in shifts) <= _PAD

    f32 = jnp.float32
    wa = params["conv_a_w"].astype(f32)                    # (C, C, K)
    wb = params["conv_b_w"].astype(f32)
    wres = params["res_conv_w"][:, :, 0].astype(f32)       # (C, C)
    wc = params["conv_c_w"][:, :, 0].astype(f32)           # (C, 2C)

    # Combined first-stage weight: rows [res ; conv_a ; conv_b], columns are the
    # shift blocks of the im2col slab.  Tiny; constant-folds under jit.
    w1 = jnp.zeros((3 * C, S * C), f32)
    w1 = w1.at[0:C, col[0] * C:(col[0] + 1) * C].set(wres)
    for k in range(K):
        ja = col[shifts_a[k]]
        jb = col[shifts_b[k]]
        w1 = w1.at[C:2 * C, ja * C:(ja + 1) * C].add(wa[:, :, k])
        w1 = w1.at[2 * C:3 * C, jb * C:(jb + 1) * C].add(wb[:, :, k])
    b1 = jnp.concatenate([params["res_conv_b"], params["conv_a_b"],
                          params["conv_b_b"]]).astype(f32).reshape(3 * C, 1)
    bc = params["conv_c_b"].astype(f32).reshape(C, 1)

    w1 = w1.astype(matmul_dtype)
    wc = wc.astype(matmul_dtype)

    # Fold batch into the matmul N dimension: bb batch elements per grid step so
    # N = bb*L >= 256 lanes when possible (amortizes per-step overhead, MXU
    # drain, weight residency).  For larger B this still leaves >= 2 "parallel"
    # grid steps, so both v7x TensorCores get used.
    if batch_block is None:
        target = max(1, 256 // L) if (L < 256 and L % 128 == 0) else 1
        bb = 1
        for d in range(1, B + 1):
            if B % d == 0 and d <= target:
                bb = d
    else:
        bb = batch_block
    assert B % bb == 0
    grid = (B // bb,)

    kernel = _make_kernel(C, L, bb, shifts, matmul_dtype)

    full = lambda a: pl.BlockSpec(a.shape, lambda g: (0,) * a.ndim)
    grid_spec = pltpu.PrefetchScalarGridSpec(
        num_scalar_prefetch=0,
        grid=grid,
        in_specs=[
            pl.BlockSpec((bb, C, L), lambda g: (g, 0, 0)),   # x (lane-dense)
            full(w1), full(b1), full(wc), full(bc),
        ],
        out_specs=[
            pl.BlockSpec((bb, C, L), lambda g: (g, 0, 0)),   # res_x + y
            pl.BlockSpec((bb, C, L), lambda g: (g, 0, 0)),   # y
        ],
        scratch_shapes=[
            pltpu.VMEM((bb, C, L + 2 * _PAD), f32),          # zero-padded x
            pltpu.VMEM((S * C, bb * L), f32),                # im2col slab
        ],
    )

    itemsize = jnp.dtype(x.dtype).itemsize
    mm_itemsize = jnp.dtype(matmul_dtype).itemsize
    flops = 2 * (3 * C * S * C + 2 * C * C) * B * L
    bytes_accessed = (3 * B * C * L * itemsize                # x + two outputs
                      + (w1.size + wc.size) * mm_itemsize
                      + (b1.size + bc.size) * 4)
    cost = pl.CostEstimate(flops=flops,
                           transcendentals=2 * C * B * L,     # exp inside ELU
                           bytes_accessed=bytes_accessed)

    out_shape = (jax.ShapeDtypeStruct((B, C, L), x.dtype),
                 jax.ShapeDtypeStruct((B, C, L), x.dtype))

    # NOTE: at larger C/L, size the block so (x block + 2 outputs + scratch) x
    # double-buffering fits v7x's 64 MiB VMEM and set vmem_limit_bytes here.
    return pl.pallas_call(
        kernel,
        out_shape=out_shape,
        grid_spec=grid_spec,
        cost_estimate=cost,
        compiler_params=pltpu.CompilerParams(
            dimension_semantics=("parallel",)),
    )(x, w1, b1, wc, bc)


def _reference(x, params, *, kernel_size, dilation):
    """Pure-JAX reference matching the PyTorch forward."""
    dn = ("NCH", "OIH", "NCH")

    def conv1d(x, w, b, padding, dil):
        y = jax.lax.conv_general_dilated(
            x, w, window_strides=(1,), padding=[(padding, padding)],
            rhs_dilation=(dil,), dimension_numbers=dn)
        return y + b[None, :, None]

    pad_a = (kernel_size // 2) * dilation
    res_x = conv1d(x, params["res_conv_w"], params["res_conv_b"], 0, 1)
    x_a = conv1d(x, params["conv_a_w"], params["conv_a_b"], pad_a, dilation)
    x_b = conv1d(x, params["conv_b_w"], params["conv_b_b"], 2 * pad_a,
                 2 * dilation)
    h = jax.nn.elu(jnp.concatenate([x_a, x_b], axis=1))
    y = conv1d(h, params["conv_c_w"], params["conv_c_b"], 0, 1)
    return res_x + y, y


def init_params(key, ch, kernel_size):
    ks = jax.random.split(key, 8)
    s = 0.1
    return {
        "res_conv_w": s * jax.random.normal(ks[0], (ch, ch, 1), jnp.float32),
        "res_conv_b": s * jax.random.normal(ks[1], (ch,), jnp.float32),
        "conv_a_w": s * jax.random.normal(ks[2], (ch, ch, kernel_size), jnp.float32),
        "conv_a_b": s * jax.random.normal(ks[3], (ch,), jnp.float32),
        "conv_b_w": s * jax.random.normal(ks[4], (ch, ch, kernel_size), jnp.float32),
        "conv_b_b": s * jax.random.normal(ks[5], (ch,), jnp.float32),
        "conv_c_w": s * jax.random.normal(ks[6], (ch, 2 * ch, 1), jnp.float32),
        "conv_c_b": s * jax.random.normal(ks[7], (ch,), jnp.float32),
    }


if __name__ == "__main__":
    B, CH, L = 2, 8, 128
    KERNEL_SIZE, DILATION = 3, 1

    key = jax.random.PRNGKey(0)
    kx, kp = jax.random.split(key)
    x = jax.random.normal(kx, (B, CH, L), jnp.float32)
    params = init_params(kp, CH, KERNEL_SIZE)

    ref_res, ref_c = _reference(x, params, kernel_size=KERNEL_SIZE,
                                dilation=DILATION)

    # f32 MXU operands: matches the conv reference tightly.
    fwd_f32 = functools.partial(residual_block_forward,
                                kernel_size=KERNEL_SIZE, dilation=DILATION,
                                matmul_dtype=jnp.float32)
    out_res, out_c = jax.jit(fwd_f32)(x, params)
    jax.block_until_ready((out_res, out_c))
    assert jnp.allclose(out_res, ref_res, atol=1e-4, rtol=1e-4)
    assert jnp.allclose(out_c, ref_c, atol=1e-4, rtol=1e-4)

    # bf16 MXU operands (v6e/v7x fast path); elementwise math stays in f32.
    fwd_bf16 = functools.partial(residual_block_forward,
                                 kernel_size=KERNEL_SIZE, dilation=DILATION,
                                 matmul_dtype=jnp.bfloat16)
    out_res16, out_c16 = jax.jit(fwd_bf16)(x, params)
    jax.block_until_ready((out_res16, out_c16))
    assert jnp.allclose(out_res16, ref_res, atol=5e-2, rtol=5e-2)
    assert jnp.allclose(out_c16, ref_c, atol=5e-2, rtol=5e-2)

    print("KERNEL_OK")
</pallas_src>

<mosaic_0001>
module attributes {stable_mosaic.version = 11 : i64} {
  func.func @kernel(%arg0: i32, %arg1: memref<2x8x128xf32, #tpu.memory_space<vmem>>, %arg2: memref<24x40xf32, #tpu.memory_space<vmem>>, %arg3: memref<24x1xf32, #tpu.memory_space<vmem>>, %arg4: memref<8x16xf32, #tpu.memory_space<vmem>>, %arg5: memref<8x1xf32, #tpu.memory_space<vmem>>, %arg6: memref<2x8x128xf32, #tpu.memory_space<vmem>>, %arg7: memref<2x8x128xf32, #tpu.memory_space<vmem>>, %arg8: memref<2x8x384xf32, #tpu.memory_space<vmem>>, %arg9: memref<40x256xf32, #tpu.memory_space<vmem>>) attributes {dimension_semantics = [#tpu.dimension_semantics<parallel>], iteration_bounds = array<i64: 1>, scalar_prefetch = 0 : i64, scratch_operands = 2 : i64, tpu.core_type = #tpu.core_type<tc>, window_params = [{transform_indices = @transform_0, window_bounds = array<i64: 2, 8, 128>}, {pipeline_mode = #tpu.pipeline_mode<synchronous>, transform_indices = @transform_1, window_bounds = array<i64: 24, 40>}, {pipeline_mode = #tpu.pipeline_mode<synchronous>, transform_indices = @transform_2, window_bounds = array<i64: 24, 1>}, {pipeline_mode = #tpu.pipeline_mode<synchronous>, transform_indices = @transform_3, window_bounds = array<i64: 8, 16>}, {pipeline_mode = #tpu.pipeline_mode<synchronous>, transform_indices = @transform_4, window_bounds = array<i64: 8, 1>}, {transform_indices = @transform_5, window_bounds = array<i64: 2, 8, 128>}, {transform_indices = @transform_6, window_bounds = array<i64: 2, 8, 128>}]} {
    %cst = arith.constant 0.000000e+00 : f32
    %0 = vector.broadcast %cst : f32 to vector<2x8x384xf32>
    %c0 = arith.constant 0 : index
    %c0_0 = arith.constant 0 : index
    %c0_1 = arith.constant 0 : index
    %1 = vector.load %arg8[%c0, %c0_0, %c0_1] : memref<2x8x384xf32, #tpu.memory_space<vmem>>, vector<2x8x384xf32>
    tpu.vector_store %arg8[%c0, %c0_0, %c0_1], %0 {strides = array<i32>} : memref<2x8x384xf32, #tpu.memory_space<vmem>>, vector<2x8x384xf32>,
    %c0_2 = arith.constant 0 : index
    %c0_3 = arith.constant 0 : index
    %c0_4 = arith.constant 0 : index
    %2 = vector.load %arg1[%c0_2, %c0_3, %c0_4] : memref<2x8x128xf32, #tpu.memory_space<vmem>>, vector<1x8x128xf32>
    %3 = vector.shape_cast %2 : vector<1x8x128xf32> to vector<8x128xf32>
    %c0_5 = arith.constant 0 : index
    %c0_6 = arith.constant 0 : index
    %c128 = arith.constant 128 : index
    %4 = vector.load %arg8[%c0_5, %c0_6, %c128] : memref<2x8x384xf32, #tpu.memory_space<vmem>>, vector<1x8x128xf32>
    %5 = vector.shape_cast %4 : vector<1x8x128xf32> to vector<8x128xf32>
    %6 = vector.shape_cast %3 : vector<8x128xf32> to vector<1x8x128xf32>
    tpu.vector_store %arg8[%c0_5, %c0_6, %c128], %6 {strides = array<i32>} : memref<2x8x384xf32, #tpu.memory_space<vmem>>, vector<1x8x128xf32>,
    %c1 = arith.constant 1 : index
    %c0_7 = arith.constant 0 : index
    %c0_8 = arith.constant 0 : index
    %7 = vector.load %arg1[%c1, %c0_7, %c0_8] : memref<2x8x128xf32, #tpu.memory_space<vmem>>, vector<1x8x128xf32>
    %8 = vector.shape_cast %7 : vector<1x8x128xf32> to vector<8x128xf32>
    %c1_9 = arith.constant 1 : index
    %c0_10 = arith.constant 0 : index
    %c128_11 = arith.constant 128 : index
    %9 = vector.load %arg8[%c1_9, %c0_10, %c128_11] : memref<2x8x384xf32, #tpu.memory_space<vmem>>, vector<1x8x128xf32>
    %10 = vector.shape_cast %9 : vector<1x8x128xf32> to vector<8x128xf32>
    %11 = vector.shape_cast %8 : vector<8x128xf32> to vector<1x8x128xf32>
    tpu.vector_store %arg8[%c1_9, %c0_10, %c128_11], %11 {strides = array<i32>} : memref<2x8x384xf32, #tpu.memory_space<vmem>>, vector<1x8x128xf32>,
    %c0_12 = arith.constant 0 : index
    %c0_13 = arith.constant 0 : index
    %c0_14 = arith.constant 0 : index
    %12 = vector.load %arg8[%c0_12, %c0_13, %c0_14] : memref<2x8x384xf32, #tpu.memory_space<vmem>>, vector<1x8x384xf32>
    %13 = vector.shape_cast %12 : vector<1x8x384xf32> to vector<8x384xf32>
    %14 = vector.extract_strided_slice %13 {offsets = [0, 126], sizes = [8, 128], strides = [1, 1]} : vector<8x384xf32> to vector<8x128xf32>
    %c0_15 = arith.constant 0 : index
    %c0_16 = arith.constant 0 : index
    %15 = vector.load %arg9[%c0_15, %c0_16] : memref<40x256xf32, #tpu.memory_space<vmem>>, vector<8x128xf32>
    tpu.vector_store %arg9[%c0_15, %c0_16], %14 {strides = array<i32>} : memref<40x256xf32, #tpu.memory_space<vmem>>, vector<8x128xf32>,
    %16 = vector.extract_strided_slice %13 {offsets = [0, 127], sizes = [8, 128], strides = [1, 1]} : vector<8x384xf32> to vector<8x128xf32>
    %c8 = arith.constant 8 : index
    %c0_17 = arith.constant 0 : index
    %17 = vector.load %arg9[%c8, %c0_17] : memref<40x256xf32, #tpu.memory_space<vmem>>, vector<8x128xf32>
    tpu.vector_store %arg9[%c8, %c0_17], %16 {strides = array<i32>} : memref<40x256xf32, #tpu.memory_space<vmem>>, vector<8x128xf32>,
    %18 = vector.extract_strided_slice %13 {offsets = [0, 128], sizes = [8, 128], strides = [1, 1]} : vector<8x384xf32> to vector<8x128xf32>
    %c16 = arith.constant 16 : index
    %c0_18 = arith.constant 0 : index
    %19 = vector.load %arg9[%c16, %c0_18] : memref<40x256xf32, #tpu.memory_space<vmem>>, vector<8x128xf32>
    tpu.vector_store %arg9[%c16, %c0_18], %18 {strides = array<i32>} : memref<40x256xf32, #tpu.memory_space<vmem>>, vector<8x128xf32>,
    %20 = vector.extract_strided_slice %13 {offsets = [0, 129], sizes = [8, 128], strides = [1, 1]} : vector<8x384xf32> to vector<8x128xf32>
    %c24 = arith.constant 24 : index
    %c0_19 = arith.constant 0 : index
    %21 = vector.load %arg9[%c24, %c0_19] : memref<40x256xf32, #tpu.memory_space<vmem>>, vector<8x128xf32>
    tpu.vector_store %arg9[%c24, %c0_19], %20 {strides = array<i32>} : memref<40x256xf32, #tpu.memory_space<vmem>>, vector<8x128xf32>,
    %22 = vector.extract_strided_slice %13 {offsets = [0, 130], sizes = [8, 128], strides = [1, 1]} : vector<8x384xf32> to vector<8x128xf32>
    %c32 = arith.constant 32 : index
    %c0_20 = arith.constant 0 : index
    %23 = vector.load %arg9[%c32, %c0_20] : memref<40x256xf32, #tpu.memory_space<vmem>>, vector<8x128xf32>
    tpu.vector_store %arg9[%c32, %c0_20], %22 {strides = array<i32>} : memref<40x256xf32, #tpu.memory_space<vmem>>, vector<8x128xf32>,
    %c1_21 = arith.constant 1 : index
    %c0_22 = arith.constant 0 : index
    %c0_23 = arith.constant 0 : index
    %24 = vector.load %arg8[%c1_21, %c0_22, %c0_23] : memref<2x8x384xf32, #tpu.memory_space<vmem>>, vector<1x8x384xf32>
    %25 = vector.shape_cast %24 : vector<1x8x384xf32> to vector<8x384xf32>
    %26 = vector.extract_strided_slice %25 {offsets = [0, 126], sizes = [8, 128], strides = [1, 1]} : vector<8x384xf32> to vector<8x128xf32>
    %c0_24 = arith.constant 0 : index
    %c128_25 = arith.constant 128 : index
    %27 = vector.load %arg9[%c0_24, %c128_25] : memref<40x256xf32, #tpu.memory_space<vmem>>, vector<8x128xf32>
    tpu.vector_store %arg9[%c0_24, %c128_25], %26 {strides = array<i32>} : memref<40x256xf32, #tpu.memory_space<vmem>>, vector<8x128xf32>,
    %28 = vector.extract_strided_slice %25 {offsets = [0, 127], sizes = [8, 128], strides = [1, 1]} : vector<8x384xf32> to vector<8x128xf32>
    %c8_26 = arith.constant 8 : index
    %c128_27 = arith.constant 128 : index
    %29 = vector.load %arg9[%c8_26, %c128_27] : memref<40x256xf32, #tpu.memory_space<vmem>>, vector<8x128xf32>
    tpu.vector_store %arg9[%c8_26, %c128_27], %28 {strides = array<i32>} : memref<40x256xf32, #tpu.memory_space<vmem>>, vector<8x128xf32>,
    %30 = vector.extract_strided_slice %25 {offsets = [0, 128], sizes = [8, 128], strides = [1, 1]} : vector<8x384xf32> to vector<8x128xf32>
    %c16_28 = arith.constant 16 : index
    %c128_29 = arith.constant 128 : index
    %31 = vector.load %arg9[%c16_28, %c128_29] : memref<40x256xf32, #tpu.memory_space<vmem>>, vector<8x128xf32>
    tpu.vector_store %arg9[%c16_28, %c128_29], %30 {strides = array<i32>} : memref<40x256xf32, #tpu.memory_space<vmem>>, vector<8x128xf32>,
    %32 = vector.extract_strided_slice %25 {offsets = [0, 129], sizes = [8, 128], strides = [1, 1]} : vector<8x384xf32> to vector<8x128xf32>
    %c24_30 = arith.constant 24 : index
    %c128_31 = arith.constant 128 : index
    %33 = vector.load %arg9[%c24_30, %c128_31] : memref<40x256xf32, #tpu.memory_space<vmem>>, vector<8x128xf32>
    tpu.vector_store %arg9[%c24_30, %c128_31], %32 {strides = array<i32>} : memref<40x256xf32, #tpu.memory_space<vmem>>, vector<8x128xf32>,
    %34 = vector.extract_strided_slice %25 {offsets = [0, 130], sizes = [8, 128], strides = [1, 1]} : vector<8x384xf32> to vector<8x128xf32>
    %c32_32 = arith.constant 32 : index
    %c128_33 = arith.constant 128 : index
    %35 = vector.load %arg9[%c32_32, %c128_33] : memref<40x256xf32, #tpu.memory_space<vmem>>, vector<8x128xf32>
    tpu.vector_store %arg9[%c32_32, %c128_33], %34 {strides = array<i32>} : memref<40x256xf32, #tpu.memory_space<vmem>>, vector<8x128xf32>,
    %c0_34 = arith.constant 0 : index
    %c0_35 = arith.constant 0 : index
    %36 = vector.load %arg9[%c0_34, %c0_35] : memref<40x256xf32, #tpu.memory_space<vmem>>, vector<40x256xf32>
    %c0_36 = arith.constant 0 : index
    %c0_37 = arith.constant 0 : index
    %37 = vector.load %arg2[%c0_36, %c0_37] : memref<24x40xf32, #tpu.memory_space<vmem>>, vector<24x40xf32>
    %cst_38 = arith.constant dense<0.000000e+00> : vector<24x256xf32>
    %38 = tpu.matmul %37, %36, %cst_38 {dimension_numbers = #tpu.dot_dimension_numbers<[1], [0], [0], [1], [0, 0, 1, 1], [], []>} : vector<24x40xf32>, vector<40x256xf32>, vector<24x256xf32> -> vector<24x256xf32>
    %c0_39 = arith.constant 0 : index
    %c0_40 = arith.constant 0 : index
    %39 = vector.load %arg3[%c0_39, %c0_40] : memref<24x1xf32, #tpu.memory_space<vmem>>, vector<24x1xf32>
    %40 = vector.broadcast %39 : vector<24x1xf32> to vector<24x256xf32>
    %41 = arith.addf %38, %40 : vector<24x256xf32>
    %42 = vector.extract_strided_slice %41 {offsets = [0, 0], sizes = [8, 256], strides = [1, 1]} : vector<24x256xf32> to vector<8x256xf32>
    %43 = vector.extract_strided_slice %41 {offsets = [8, 0], sizes = [16, 256], strides = [1, 1]} : vector<24x256xf32> to vector<16x256xf32>
    %cst_41 = arith.constant 0.000000e+00 : f32
    %44 = vector.broadcast %cst_41 : f32 to vector<16x256xf32>
    %45 = arith.cmpf ogt, %43, %44 : vector<16x256xf32>
    %cst_42 = arith.constant 0.000000e+00 : f32
    %46 = vector.broadcast %cst_42 : f32 to vector<16x256xf32>
    %47 = arith.minimumf %43, %46 : vector<16x256xf32>
    %48 = math.exp %47 : vector<16x256xf32>
    %cst_43 = arith.constant 1.000000e+00 : f32
    %49 = vector.broadcast %cst_43 : f32 to vector<16x256xf32>
    %50 = arith.subf %48, %49 : vector<16x256xf32>
    %51 = arith.select %45, %43, %50 : vector<16x256xi1>, vector<16x256xf32>
    %c0_44 = arith.constant 0 : index
    %c0_45 = arith.constant 0 : index
    %52 = vector.load %arg4[%c0_44, %c0_45] : memref<8x16xf32, #tpu.memory_space<vmem>>, vector<8x16xf32>
    %cst_46 = arith.constant dense<0.000000e+00> : vector<8x256xf32>
    %53 = tpu.matmul %52, %51, %cst_46 {dimension_numbers = #tpu.dot_dimension_numbers<[1], [0], [0], [1], [0, 0, 1, 1], [], []>} : vector<8x16xf32>, vector<16x256xf32>, vector<8x256xf32> -> vector<8x256xf32>
    %c0_47 = arith.constant 0 : index
    %c0_48 = arith.constant 0 : index
    %54 = vector.load %arg5[%c0_47, %c0_48] : memref<8x1xf32, #tpu.memory_space<vmem>>, vector<8x1xf32>
    %55 = vector.broadcast %54 : vector<8x1xf32> to vector<8x256xf32>
    %56 = arith.addf %53, %55 : vector<8x256xf32>
    %57 = arith.addf %42, %56 : vector<8x256xf32>
    %58 = vector.extract_strided_slice %56 {offsets = [0, 0], sizes = [8, 128], strides = [1, 1]} : vector<8x256xf32> to vector<8x128xf32>
    %c0_49 = arith.constant 0 : index
    %c0_50 = arith.constant 0 : index
    %c0_51 = arith.constant 0 : index
    %59 = vector.load %arg7[%c0_49, %c0_50, %c0_51] : memref<2x8x128xf32, #tpu.memory_space<vmem>>, vector<1x8x128xf32>
    %60 = vector.shape_cast %59 : vector<1x8x128xf32> to vector<8x128xf32>
    %61 = vector.shape_cast %58 : vector<8x128xf32> to vector<1x8x128xf32>
    tpu.vector_store %arg7[%c0_49, %c0_50, %c0_51], %61 {strides = array<i32>} : memref<2x8x128xf32, #tpu.memory_space<vmem>>, vector<1x8x128xf32>,
    %62 = vector.extract_strided_slice %57 {offsets = [0, 0], sizes = [8, 128], strides = [1, 1]} : vector<8x256xf32> to vector<8x128xf32>
    %c0_52 = arith.constant 0 : index
    %c0_53 = arith.constant 0 : index
    %c0_54 = arith.constant 0 : index
    %63 = vector.load %arg6[%c0_52, %c0_53, %c0_54] : memref<2x8x128xf32, #tpu.memory_space<vmem>>, vector<1x8x128xf32>
    %64 = vector.shape_cast %63 : vector<1x8x128xf32> to vector<8x128xf32>
    %65 = vector.shape_cast %62 : vector<8x128xf32> to vector<1x8x128xf32>
    tpu.vector_store %arg6[%c0_52, %c0_53, %c0_54], %65 {strides = array<i32>} : memref<2x8x128xf32, #tpu.memory_space<vmem>>, vector<1x8x128xf32>,
    %66 = vector.extract_strided_slice %56 {offsets = [0, 128], sizes = [8, 128], strides = [1, 1]} : vector<8x256xf32> to vector<8x128xf32>
    %c1_55 = arith.constant 1 : index
    %c0_56 = arith.constant 0 : index
    %c0_57 = arith.constant 0 : index
    %67 = vector.load %arg7[%c1_55, %c0_56, %c0_57] : memref<2x8x128xf32, #tpu.memory_space<vmem>>, vector<1x8x128xf32>
    %68 = vector.shape_cast %67 : vector<1x8x128xf32> to vector<8x128xf32>
    %69 = vector.shape_cast %66 : vector<8x128xf32> to vector<1x8x128xf32>
    tpu.vector_store %arg7[%c1_55, %c0_56, %c0_57], %69 {strides = array<i32>} : memref<2x8x128xf32, #tpu.memory_space<vmem>>, vector<1x8x128xf32>,
    %70 = vector.extract_strided_slice %57 {offsets = [0, 128], sizes = [8, 128], strides = [1, 1]} : vector<8x256xf32> to vector<8x128xf32>
    %c1_58 = arith.constant 1 : index
    %c0_59 = arith.constant 0 : index
    %c0_60 = arith.constant 0 : index
    %71 = vector.load %arg6[%c1_58, %c0_59, %c0_60] : memref<2x8x128xf32, #tpu.memory_space<vmem>>, vector<1x8x128xf32>
    %72 = vector.shape_cast %71 : vector<1x8x128xf32> to vector<8x128xf32>
    %73 = vector.shape_cast %70 : vector<8x128xf32> to vector<1x8x128xf32>
    tpu.vector_store %arg6[%c1_58, %c0_59, %c0_60], %73 {strides = array<i32>} : memref<2x8x128xf32, #tpu.memory_space<vmem>>, vector<1x8x128xf32>,
    return
  }
  func.func @transform_0(%arg0: i32) -> (i32, i32, i32) {
    %c0_i32 = arith.constant 0 : i32
    %c0_i32_0 = arith.constant 0 : i32
    %c0_i32_1 = arith.constant 0 : i32
    return %arg0, %c0_i32, %c0_i32_0 : i32, i32, i32
  }
  func.func @transform_1(%arg0: i32) -> (i32, i32) {
    %c0_i32 = arith.constant 0 : i32
    %c0_i32_0 = arith.constant 0 : i32
    %c0_i32_1 = arith.constant 0 : i32
    return %c0_i32, %c0_i32_0 : i32, i32
  }
  func.func @transform_2(%arg0: i32) -> (i32, i32) {
    %c0_i32 = arith.constant 0 : i32
    %c0_i32_0 = arith.constant 0 : i32
    %c0_i32_1 = arith.constant 0 : i32
    return %c0_i32, %c0_i32_0 : i32, i32
  }
  func.func @transform_3(%arg0: i32) -> (i32, i32) {
    %c0_i32 = arith.constant 0 : i32
    %c0_i32_0 = arith.constant 0 : i32
    %c0_i32_1 = arith.constant 0 : i32
    return %c0_i32, %c0_i32_0 : i32, i32
  }
  func.func @transform_4(%arg0: i32) -> (i32, i32) {
    %c0_i32 = arith.constant 0 : i32
    %c0_i32_0 = arith.constant 0 : i32
    %c0_i32_1 = arith.constant 0 : i32
    return %c0_i32, %c0_i32_0 : i32, i32
  }
  func.func @transform_5(%arg0: i32) -> (i32, i32, i32) {
    %c0_i32 = arith.constant 0 : i32
    %c0_i32_0 = arith.constant 0 : i32
    %c0_i32_1 = arith.constant 0 : i32
    return %arg0, %c0_i32, %c0_i32_0 : i32, i32, i32
  }
  func.func @transform_6(%arg0: i32) -> (i32, i32, i32) {
    %c0_i32 = arith.constant 0 : i32
    %c0_i32_0 = arith.constant 0 : i32
    %c0_i32_1 = arith.constant 0 : i32
    return %arg0, %c0_i32, %c0_i32_0 : i32, i32, i32
  }
}

</mosaic_0001>

<bundles_post_ra>
// kernel: residual_block_forward.1
= control target key start
LH: loop header
LB: loop body
LE: loop exit
PB: predicated region body
PF: predicated region fallthrough
CT: control target
= control target key end

     0   :  { %12 = vsyncpa [#allocation5], 0  ;;  %s551_s0 = inlined_call_operand.vmem [shape: f32[2,8,128], index: 0, kind: input, shape index: {}]   ;;  %s552_s1 = inlined_call_operand.vmem [shape: f32[24,40], index: 1, kind: input, shape index: {}]   ;;  %s553_s2 = inlined_call_operand.vmem [shape: f32[24,1], index: 2, kind: input, shape index: {}]   ;;  %s554_s3 = inlined_call_operand.vmem [shape: f32[8,16], index: 3, kind: input, shape index: {}]   ;;  %s555_s4 = inlined_call_operand.vmem [shape: f32[8,1], index: 4, kind: input, shape index: {}]   ;;  %s556_s5 = inlined_call_operand.hbm [shape: f32[2,8,128], index: 5, kind: output, shape index: {0}]   ;;  %s557_s6 = inlined_call_operand.hbm [shape: f32[2,8,128], index: 6, kind: output, shape index: {1}]  }
   0x1   :  { %v30_v0 = vld [vmem:[%s551_s0] sm:$0xff] }
   0x2   :  { %v365_v1 = vpack.i.bf16 0.0, %v30_v0 }
   0x3   :  { %13 = vsyncpa [#allocation7], 0  ;;  %v458_v2 = vmov 0.0   ;;  %s459_s23 = smov 127   ;;  %s460_s24 = smov 126   ;;  %v509_v4 = vld [vmem:[%s551_s0 + $0x8] sm:$0xff] }
   0x4   :  { %v375_v3 = vpack.i.bf16 %v30_v0, %v458_v2  ;;  %366 = vrot.lane.b32.xlu1 %v365_v1, %s459_s23  ;;  %356 = vrot.lane.b32.xlu0 %v365_v1, %s460_s24  ;;  %s461_s27 = smov 1   ;;  %v370_v5 = vpack.i.bf16 0.0, %v509_v4  ;;  %v380_v6 = vpack.i.bf16 %v509_v4, %v458_v2  ;;  %s462_s28 = smov 2   ;;  %v123_v8 = vld [vmem:[%s553_s2] sm:$0xff]  ;;  %v124_v9 = vld [vmem:[%s553_s2 + $0x8] sm:$0xff]  ;;  %vm71_vm0 = vcmask 1031168  }
   0x5   :  { %v463_v12 = vmov 0   ;;  %v125_v13 = vld [vmem:[%s553_s2 + $0x10] sm:$0xff]  ;;  %vm63_vm1 = vcmask 1039360   ;;  %vm53_vm2 = vcmask 7168   ;;  %v228_v26 = vld [vmem:[%s555_s4] sm:$0xff]  ;;  %vm45_vm3 = vcmask 15360  }
   0x6   :  { %376 = vrot.lane.b32.xlu2 %v375_v3, %s461_s27  ;;  %397 = vset.pattern.permute.xlu1 %v463_v12  ;;  %v120_v44 = vld [vmem:[%s552_s1] sm:$0xff]  ;;  %vm141_vm4 = vcmask 326656   ;;  %v122_v45 = vld [vmem:[%s552_s1 + $0x10] sm:$0xff]  ;;  %v121_v46 = vld [vmem:[%s552_s1 + $0x8] sm:$0xff]  ;;  %vm234_vm8 = vcmask 130048   ;;  %s464_s17 = smov [#allocation6]  }
   0x7   :  { %396 = vset.pattern.permute.xlu0 %v463_v12  ;;  %395 = vset.pattern.permute.xlu2 %v463_v12  ;;  %s303_s18 = sshll.u32 %s464_s17, 4  ;;  %s305_s21 = sshll.u32 %s557_s6, 4  ;;  %s304_s18 = int_to_ptr.vmem [resolvable:$true] %s303_s18  ;;  %s306_s21 = int_to_ptr.hbm [resolvable:$true] %s305_s21 }
   0x8   :  { %s465_s22 = smov [#allocation4]   ;;  %s292_s25 = sshll.u32 %s556_s5, 4  ;;  %s293_s25 = int_to_ptr.hbm [resolvable:$true] %s292_s25 }
   0x9   :  { %s466_s6 = smov 128   ;;  %s467_s26 = smov 8  }
   0xc   :  { %371 = vrot.lane.b32.xlu1 %v370_v5, %s459_s23  ;;  %361 = vrot.lane.b32.xlu0 %v370_v5, %s460_s24 }
   0xe   :  { %381 = vrot.lane.b32.xlu2 %v380_v6, %s461_s27 }
  0x14   :  { %391 = vrot.lane.b32.xlu1 %v380_v6, %s462_s28  ;;  %386 = vrot.lane.b32.xlu0 %v375_v3, %s462_s28 }
  0x16   :  { %138 = vperm.xlu2 %395, %v125_v13   ;;  %v227_v13 = vld [vmem:[%s554_s3] sm:$0xff]  ;;  %s290_s3 = sshll.u32 %s465_s22, 4  ;;  %s291_s3 = int_to_ptr.vmem [resolvable:$true] %s290_s3 }
  0x1c   :  { %128 = vperm.xlu1 %397, %v123_v8   ;;  %133 = vperm.xlu0 %396, %v124_v9  }
  0x1e   :  { %231 = vperm.xlu2 %395, %v228_v26  }
  0x60   :  { %v377_v7 = vpop.permute.xlu2 %376 }
  0x61   :  { %v379_v19 = vunpack.i.h.bf16 %v377_v7  ;;  %v378_v20 = vunpack.i.l.bf16 %v377_v7 }
  0x63   :  { %v54_v22 = vsel %vm53_vm2, %v378_v20, %v379_v19 }
  0x68   :  { %v382_v23 = vpop.permute.xlu2 %381 }
  0x69   :  { %v384_v32 = vunpack.i.h.bf16 %v382_v23  ;;  %v383_v33 = vunpack.i.l.bf16 %v382_v23 }
  0x6b   :  { %v91_v35 = vsel %vm53_vm2, %v383_v33, %v384_v32 }
  0x70   :  { %v139_v49 = vpop.permute.xlu2 %138 }
  0x76   :  { %v367_v10 = vpop.permute.xlu1 %366  ;;  %v357_v11 = vpop.permute.xlu0 %356 }
  0x77   :  { %v369_v14 = vunpack.i.h.bf16 %v367_v10  ;;  %v368_v15 = vunpack.i.l.bf16 %v367_v10  ;;  %v359_v16 = vunpack.i.h.bf16 %v357_v11  ;;  %v358_v17 = vunpack.i.l.bf16 %v357_v11 }
  0x79   :  { %v72_v18 = vsel %vm71_vm0, %v358_v17, %v359_v16  ;;  %v64_v21 = vsel %vm63_vm1, %v368_v15, %v369_v14  ;;  %v232_v17 = vpop.permute.xlu2 %231 }
  0x7a   :  { %162 = vmatpush.msra.mxu0 %v72_v18  ;;  %335 = vmatpush.msra.mxu2 %v72_v18 }
  0x7c   :  { %163 = vmatpush.msra.mxu0 %v64_v21  ;;  %336 = vmatpush.msra.mxu2 %v64_v21 }
  0x7e   :  { %v372_v24 = vpop.permute.xlu1 %371  ;;  %v362_v25 = vpop.permute.xlu0 %361  ;;  %164 = vmatpush.msra.mxu0 %v30_v0  ;;  %337 = vmatpush.msra.mxu2 %v30_v0 }
  0x7f   :  { %v374_v27 = vunpack.i.h.bf16 %v372_v24  ;;  %v373_v28 = vunpack.i.l.bf16 %v372_v24  ;;  %v364_v29 = vunpack.i.h.bf16 %v362_v25  ;;  %v363_v30 = vunpack.i.l.bf16 %v362_v25 }
  0x80   :  { %165 = vmatpush.msra.mxu0 %v54_v22  ;;  %338 = vmatpush.msra.mxu2 %v54_v22 }
  0x81   :  { %v107_v31 = vsel %vm71_vm0, %v363_v30, %v364_v29  ;;  %v100_v34 = vsel %vm63_vm1, %v373_v28, %v374_v27 }
  0x82   :  { %188 = vmatpush.msra.mxu1 %v107_v31  ;;  %340 = vmatpush.msra.mxu3 %v107_v31 }
  0x84   :  { %189 = vmatpush.msra.mxu1 %v100_v34  ;;  %341 = vmatpush.msra.mxu3 %v100_v34 }
  0x86   :  { %v392_v36 = vpop.permute.xlu1 %391  ;;  %v387_v37 = vpop.permute.xlu0 %386  ;;  %190 = vmatpush.msra.mxu1 %v509_v4  ;;  %342 = vmatpush.msra.mxu3 %v509_v4 }
  0x87   :  { %v394_v38 = vunpack.i.h.bf16 %v392_v36  ;;  %v393_v39 = vunpack.i.l.bf16 %v392_v36  ;;  %v389_v40 = vunpack.i.h.bf16 %v387_v37  ;;  %v388_v41 = vunpack.i.l.bf16 %v387_v37 }
  0x88   :  { %191 = vmatpush.msra.mxu1 %v91_v35  ;;  %343 = vmatpush.msra.mxu3 %v91_v35 }
  0x89   :  { %v46_v42 = vsel %vm45_vm3, %v388_v41, %v389_v40  ;;  %v84_v43 = vsel %vm45_vm3, %v393_v39, %v394_v38 }
  0x8a   :  { %166 = vmatpush.msra.mxu0 %v46_v42  ;;  %339 = vmatpush.msra.mxu2 %v46_v42 }
  0x8b   :  { %192 = vmatpush.msra.mxu1 %v84_v43  ;;  %344 = vmatpush.msra.mxu3 %v84_v43 }
  0x8c   :  { %323 = vmatmul.msk.f32.vlgmr.msra.gmra.mxu0 %vm141_vm4, %v120_v44  ;;  %325 = vmatmul.msk.f32.vlgmr.msra.gmra.mxu2 %vm141_vm4, %v122_v45 }
  0x8d   :  { %326 = vmatmul.msk.f32.vlgmr.msra.gmra.mxu1 %vm141_vm4, %v120_v44  ;;  %328 = vmatmul.msk.f32.vlgmr.msra.gmra.mxu3 %vm141_vm4, %v122_v45 }
  0x8e   :  { %v134_v51 = vpop.permute.xlu0 %133  ;;  %v129_v16 = vpop.permute.xlu1 %128 }
  0x94   :  { %324 = vmatmul.msk.f32.gmra.mxu0 %vm141_vm4, %v121_v46 }
  0x95   :  { %327 = vmatmul.msk.f32.gmra.mxu1 %vm141_vm4, %v121_v46 }
 0x109   :  { %v168_v47 = vpop.f32.mrf.mxu0 }
 0x10a   :  { %v194_v48 = vpop.f32.mrf.mxu1  ;;  %v169_v19 = vadd.f32 %v168_v47, %v129_v16 }
 0x10b   :  { %v195_v22 = vadd.f32 %v194_v48, %v129_v16 }
 0x10f   :  { %v174_v50 = vpop.f32.mrf.mxu2 }
 0x110   :  { %v175_v52 = vadd.f32 %v174_v50, %v139_v49  ;;  %v200_v53 = vpop.f32.mrf.mxu3 }
 0x111   :  { %v201_v54 = vadd.f32 %v200_v53, %v139_v49  ;;  %v171_v55 = vpop.f32.mrf.mxu0 }
 0x112   :  { %v209_v56 = vmin.f32 %v175_v52, 0.0  ;;  %v172_v57 = vadd.f32 %v171_v55, %v134_v51  ;;  %v197_v58 = vpop.f32.mrf.mxu1  ;;  %vm205_vm5 = vcmp.gt.f32.partialorder %v175_v52, 0.0 }
 0x113   :  { %v210_v59 = vmin.f32 %v201_v54, 0.0  ;;  %v198_v60 = vadd.f32 %v197_v58, %v134_v51  ;;  %vm206_vm6 = vcmp.gt.f32.partialorder %v201_v54, 0.0 }
 0x114   :  { %v215_v61 = vmul.f32 1.442695, %v209_v56  ;;  %v207_v62 = vmin.f32 %v172_v57, 0.0  ;;  %vm203_vm7 = vcmp.gt.f32.partialorder %v172_v57, 0.0 }
 0x115   :  { %v217_v63 = vmul.f32 1.442695, %v210_v59  ;;  %v208_v0 = vmin.f32 %v198_v60, 0.0  ;;  %vm204_vm9 = vcmp.gt.f32.partialorder %v198_v60, 0.0 }
 0x116   :  { %398 = vpow2.f32 %v215_v61  ;;  %v211_v1 = vmul.f32 1.442695, %v207_v62 }
 0x117   :  { %400 = vpow2.f32 %v217_v63  ;;  %v213_v2 = vmul.f32 1.442695, %v208_v0 }
 0x118   :  { %402 = vpow2.f32 %v211_v1 }
 0x119   :  { %404 = vpow2.f32 %v213_v2 }
 0x11c   :  { %v399_v3 = vpop.eup %398 }
 0x11d   :  { %v401_v4 = vpop.eup %400  ;;  %v331_v5 = vadd.f32 -1.0, %v399_v3 }
 0x11e   :  { %v403_v6 = vpop.eup %402  ;;  %v332_v7 = vadd.f32 -1.0, %v401_v4 }
 0x11f   :  { %v405_v8 = vpop.eup %404  ;;  %v225_v9 = vsel %vm205_vm5, %v175_v52, %v331_v5  ;;  %v329_v10 = vadd.f32 -1.0, %v403_v6 }
 0x120   :  { %252 = vmatpush.msrb.mxu2 %v225_v9  ;;  %v226_v11 = vsel %vm206_vm6, %v201_v54, %v332_v7  ;;  %v330_v12 = vadd.f32 -1.0, %v405_v8 }
 0x121   :  { %272 = vmatpush.msrb.mxu3 %v226_v11  ;;  %v223_v14 = vsel %vm203_vm7, %v172_v57, %v329_v10 }
 0x122   :  { %253 = vmatpush.msrb.mxu2 %v223_v14  ;;  %v224_v15 = vsel %vm204_vm9, %v198_v60, %v330_v12 }
 0x123   :  { %273 = vmatpush.msrb.mxu3 %v224_v15  ;;  %333 = vmatmul.msk.f32.vlgmr.msrb.gmra.mxu2 %vm234_vm8, %v227_v13 }
 0x124   :  { %334 = vmatmul.msk.f32.vlgmr.msrb.gmra.mxu3 %vm234_vm8, %v227_v13 }
 0x1a6   :  { %v255_v18 = vpop.f32.mrf.mxu2 }
 0x1a7   :  { %v256_v20 = vadd.f32 %v255_v18, %v232_v17  ;;  %v275_v21 = vpop.f32.mrf.mxu3 }
 0x1a8   :  { %v276_v23 = vadd.f32 %v275_v21, %v232_v17 }
 0x1a9   :  { %v278_v24 = vadd.f32 %v256_v20, %v169_v19  ;;  %280 = vst [vmem:[#allocation6] sm:$0xff] %v256_v20 }
 0x1aa   :  { %v279_v25 = vadd.f32 %v276_v23, %v195_v22  ;;  %283 = vst [vmem:[#allocation6 + $0x8] sm:$0xff] %v276_v23 }
 0x1ab   :  { %281 = vst [vmem:[#allocation4] sm:$0xff] %v278_v24  ;;  %311 = dma.vmem_to_hbm [thread:$0]  %s304_s18, 256, %s306_s21, [#allocation7], %s466_s6, %s466_s6, %s467_s26  }
 0x1ac   :  { %285 = vst [vmem:[#allocation4 + $0x8] sm:$0xff] %v279_v25 }
 0x1ad   :  { %298 = dma.vmem_to_hbm [thread:$0]  %s291_s3, 256, %s293_s25, [#allocation5], %s466_s6, %s466_s6, %s467_s26  }
 0x1ae   :  { %454 = dma.done.wait [#allocation5], 256  }
 0x1af   :  { %455 = vsyncadd [#allocation5], 4294967040 }
 0x1b0   :  { %456 = dma.done.wait [#allocation7], 256  }
 0x1b1   :  { %457 = vsyncadd [#allocation7], 4294967040 }
 0x1b2   :  { %320 = vsyncpa [#allocation5], 1 }
 0x1b3   :  { %321 = vsyncpa [#allocation7], 1 }

</bundles_post_ra>
